<compile_context>
chip_gen: v6e
topology: v6e:2x2x1
jax: 0.10.0
libtpu: 0.0.40
codegen_flags: <defaults>
</compile_context>

<pallas_src>
import functools

import jax
import jax.numpy as jnp
from jax import lax
from jax.experimental import pallas as pl
from jax.experimental.pallas import tpu as pltpu


def _round_up(n, m):
    return ((n + m - 1) // m) * m


def qnet_kernel(x_ref, a_ref, w1_ref, wq_ref, vec_ref, out_ref, *, chunk, n_chunks):
    # x_ref  : (3, Bt)    state,  batch on lanes
    # a_ref  : (1, Bt)    action, batch on lanes
    # w1_ref : (128, 4)   fused layer-1 weights:
    #                       [:, 0:3] = fc_s.weight.T (rows 64..127 zero)
    #                       [:, 3]   = fc_a.weight.T (rows  0..63  zero)
    # wq_ref : (32, 128)  fc_q.weight.T
    # vec_ref: (128, 4)   packed columns: [:,0]=b1(=bs;ba), [:32,1]=bq,
    #                     [:32,2]=fc_3.weight, [0,3]=fc_3.bias
    # out_ref: (1, Bt)    lane-dense output row
    #
    # Resident params: hoisted out of the chunk loop (loaded once per grid step).
    ws_t = w1_ref[:, 0:3]        # (128, 3)
    wa_c = w1_ref[:, 3:4]        # (128, 1)
    b1 = vec_ref[:, 0:1]         # (128, 1)
    bq = vec_ref[0:32, 1:2]      # (32, 1)
    w3 = vec_ref[0:32, 2:3]      # (32, 1)
    b3 = vec_ref[0:1, 3:4]       # (1, 1)
    wq = wq_ref[...]             # (32, 128)

    def body(c, carry):
        start = pl.multiple_of(c * chunk, chunk)
        sl = pl.ds(start, chunk)
        xc = x_ref[:, sl]                                             # (3, chunk)
        ac = a_ref[:, sl]                                             # (1, chunk)
        # Layer 1: fc_s on the MXU, fc_a as a VPU outer product, fused bias.
        h = jnp.dot(ws_t, xc, preferred_element_type=jnp.float32)    # (128, chunk)
        h = jnp.maximum(h + wa_c * ac + b1, 0.0)
        # Layer 2: fc_q on the MXU.
        q = jnp.dot(wq, h, preferred_element_type=jnp.float32)       # (32, chunk)
        q = jnp.maximum(q + bq, 0.0)
        # Layer 3: fc_3 (32 -> 1) via VPU multiply + cross-sublane reduce.
        o = jnp.sum(w3 * q, axis=0, keepdims=True) + b3              # (1, chunk)
        out_ref[:, sl] = o.astype(out_ref.dtype)
        return carry

    lax.fori_loop(0, n_chunks, body, 0, unroll=min(2, n_chunks))


def _pack_params(params):
    """Repack PyTorch-style params into the fused, transposed kernel layout."""
    ws, bs = params["ws"], params["bs"]    # (3, 64), (64,)
    wa, ba = params["wa"], params["ba"]    # (1, 64), (64,)
    wq, bq = params["wq"], params["bq"]    # (128, 32), (32,)
    w3, b3 = params["w3"], params["b3"]    # (32, 1), (1,)

    w1 = jnp.zeros((128, 4), jnp.float32)
    w1 = w1.at[:64, :3].set(ws.T)          # fc_s outputs 0..63, x features
    w1 = w1.at[64:, 3].set(wa[0])          # fc_a outputs 64..127, a feature
    wq_t = wq.T                            # (32, 128)

    vec = jnp.zeros((128, 4), jnp.float32)
    vec = vec.at[:, 0].set(jnp.concatenate([bs, ba]))   # b1
    vec = vec.at[:32, 1].set(bq)
    vec = vec.at[:32, 2].set(w3[:, 0])
    vec = vec.at[0, 3].set(b3[0])
    return w1, wq_t, vec


def qnet_forward(x, a, params, *, bt=32768, chunk=512):
    """Pallas-backed QNet forward.  x: (B, 3), a: (B, 1) -> (B, 1).

    bt    : batch tile (lanes per grid step); rounded to a multiple of 128 and
            clamped to the padded batch.  ~192 B/row of streamed VMEM, so the
            32768 default fits every generation's scoped VMEM (v5e 16 MiB
            default, v6e 32, v7x 32).  On v7x pass bt <= ceil(B/2) (rounded to
            128) for large B so both TensorCores get at least one tile.
    chunk : in-kernel lane-chunk size for the hidden activation (multiple of
            128, must divide bt; auto-reduced otherwise).
    NOTE: for tiny batches the pallas_call launch overhead dominates this
    <10 KFLOP/row net; a plain XLA path would win there.  The wrapper always
    uses the kernel so the Pallas path is exercised.
    """
    B = x.shape[0]
    w1, wq_t, vec = _pack_params(params)

    # --- tile / chunk selection (bt always a multiple of 128: lane width) ---
    b128 = _round_up(max(B, 1), 128)
    bt = _round_up(max(128, min(bt, b128)), 128)
    b_pad = _round_up(B, bt)
    num_tiles = b_pad // bt
    chunk = next(c for c in (chunk, 512, 256, 128)
                 if c % 128 == 0 and c <= bt and bt % c == 0)
    n_chunks = bt // chunk

    # --- wrapper relayout: one transpose for x, a free reshape for a ---------
    x_t = x.T                        # (3, B)  -- the only real relayout left
    a_row = a.reshape(1, B)          # (1, B)  -- layout-free reshape of (B, 1)
    if b_pad != B:
        x_t = jnp.pad(x_t, ((0, 0), (0, b_pad - B)))
        a_row = jnp.pad(a_row, ((0, 0), (0, b_pad - B)))

    kernel = functools.partial(qnet_kernel, chunk=chunk, n_chunks=n_chunks)
    const = lambda i: (0, 0)
    out = pl.pallas_call(
        kernel,
        out_shape=jax.ShapeDtypeStruct((1, b_pad), jnp.float32),
        grid=(num_tiles,),
        in_specs=[
            pl.BlockSpec((3, bt), lambda i: (0, i)),    # streamed state tile
            pl.BlockSpec((1, bt), lambda i: (0, i)),    # streamed action tile
            pl.BlockSpec((128, 4), const),              # resident fused layer-1 W
            pl.BlockSpec((32, 128), const),             # resident fc_q W
            pl.BlockSpec((128, 4), const),              # resident packed vectors
        ],
        out_specs=pl.BlockSpec((1, bt), lambda i: (0, i)),
        compiler_params=pltpu.CompilerParams(
            dimension_semantics=("parallel",),
            vmem_limit_bytes=32 * 1024 * 1024,
        ),
    )(x_t, a_row, w1, wq_t, vec)

    # (1, b_pad) row -> (B, 1) to match the PyTorch module.  (Consumers that
    # only reduce the Q-values can take out[0, :B] directly and skip the copy.)
    return out[0, :B].reshape(B, 1)


def init_params(key):
    """PyTorch-style uniform(-1/sqrt(fan_in), 1/sqrt(fan_in)) init.
    Weights stored (in_features, out_features), biases (out_features,)."""
    def linear(k, fan_in, fan_out):
        kw, kb = jax.random.split(k)
        bound = 1.0 / jnp.sqrt(fan_in)
        w = jax.random.uniform(kw, (fan_in, fan_out), jnp.float32, -bound, bound)
        b = jax.random.uniform(kb, (fan_out,), jnp.float32, -bound, bound)
        return w, b

    k1, k2, k3, k4 = jax.random.split(key, 4)
    ws, bs = linear(k1, 3, 64)     # fc_s
    wa, ba = linear(k2, 1, 64)     # fc_a
    wq, bq = linear(k3, 128, 32)   # fc_q
    w3, b3 = linear(k4, 32, 1)     # fc_3
    return dict(ws=ws, bs=bs, wa=wa, ba=ba, wq=wq, bq=bq, w3=w3, b3=b3)


def qnet_reference(x, a, params):
    h1 = jax.nn.relu(x @ params["ws"] + params["bs"])
    h2 = jax.nn.relu(a @ params["wa"] + params["ba"])
    cat = jnp.concatenate([h1, h2], axis=1)
    q = jax.nn.relu(cat @ params["wq"] + params["bq"])
    return q @ params["w3"] + params["b3"]


if __name__ == "__main__":
    key = jax.random.PRNGKey(0)
    kp, kx, ka = jax.random.split(key, 3)
    params = init_params(kp)

    B = 1000
    x = jax.random.normal(kx, (B, 3), jnp.float32)   # state  (B, 3)
    a = jax.random.normal(ka, (B, 1), jnp.float32)   # action (B, 1)
    ref = qnet_reference(x, a, params)

    # Small tiles: exercises the multi-tile grid (4 tiles), tail padding and a
    # 2-iteration in-kernel chunk loop.
    out_small = qnet_forward(x, a, params, bt=256, chunk=128)
    jax.block_until_ready(out_small)
    assert out_small.shape == (B, 1), out_small.shape
    assert jnp.allclose(out_small, ref, atol=1e-4, rtol=1e-4), \
        float(jnp.max(jnp.abs(out_small - ref)))

    # Production defaults (bt auto-clamps to the padded batch): single tile,
    # chunk=512, 2 chunk iterations.
    out_big = qnet_forward(x, a, params)
    jax.block_until_ready(out_big)
    assert jnp.allclose(out_big, ref, atol=1e-4, rtol=1e-4), \
        float(jnp.max(jnp.abs(out_big - ref)))

    print("KERNEL_OK")
</pallas_src>

<mosaic_0001>
module attributes {stable_mosaic.version = 11 : i64} {
  func.func @qnet_kernel(%arg0: i32, %arg1: memref<3x256xf32, #tpu.memory_space<vmem>>, %arg2: memref<1x256xf32, #tpu.memory_space<vmem>>, %arg3: memref<128x4xf32, #tpu.memory_space<vmem>>, %arg4: memref<32x128xf32, #tpu.memory_space<vmem>>, %arg5: memref<128x4xf32, #tpu.memory_space<vmem>>, %arg6: memref<1x256xf32, #tpu.memory_space<vmem>>) attributes {dimension_semantics = [#tpu.dimension_semantics<parallel>], iteration_bounds = array<i64: 4>, scalar_prefetch = 0 : i64, scratch_operands = 0 : i64, tpu.core_type = #tpu.core_type<tc>, window_params = [{transform_indices = @transform_0, window_bounds = array<i64: 3, 256>}, {transform_indices = @transform_1, window_bounds = array<i64: 1, 256>}, {pipeline_mode = #tpu.pipeline_mode<synchronous>, transform_indices = @transform_2, window_bounds = array<i64: 128, 4>}, {pipeline_mode = #tpu.pipeline_mode<synchronous>, transform_indices = @transform_3, window_bounds = array<i64: 32, 128>}, {pipeline_mode = #tpu.pipeline_mode<synchronous>, transform_indices = @transform_4, window_bounds = array<i64: 128, 4>}, {transform_indices = @transform_5, window_bounds = array<i64: 1, 256>}]} {
    %c0 = arith.constant 0 : index
    %c0_0 = arith.constant 0 : index
    %0 = vector.load %arg3[%c0, %c0_0] : memref<128x4xf32, #tpu.memory_space<vmem>>, vector<128x3xf32>
    %c0_1 = arith.constant 0 : index
    %c3 = arith.constant 3 : index
    %1 = vector.load %arg3[%c0_1, %c3] : memref<128x4xf32, #tpu.memory_space<vmem>>, vector<128x1xf32>
    %c0_2 = arith.constant 0 : index
    %c0_3 = arith.constant 0 : index
    %2 = vector.load %arg5[%c0_2, %c0_3] : memref<128x4xf32, #tpu.memory_space<vmem>>, vector<128x1xf32>
    %c0_4 = arith.constant 0 : index
    %c1 = arith.constant 1 : index
    %3 = vector.load %arg5[%c0_4, %c1] : memref<128x4xf32, #tpu.memory_space<vmem>>, vector<32x1xf32>
    %c0_5 = arith.constant 0 : index
    %c2 = arith.constant 2 : index
    %4 = vector.load %arg5[%c0_5, %c2] : memref<128x4xf32, #tpu.memory_space<vmem>>, vector<32x1xf32>
    %c0_6 = arith.constant 0 : index
    %c3_7 = arith.constant 3 : index
    %5 = vector.load %arg5[%c0_6, %c3_7] : memref<128x4xf32, #tpu.memory_space<vmem>>, vector<1x1xf32>
    %c0_8 = arith.constant 0 : index
    %c0_9 = arith.constant 0 : index
    %6 = vector.load %arg4[%c0_8, %c0_9] : memref<32x128xf32, #tpu.memory_space<vmem>>, vector<32x128xf32>
    %c0_i32 = arith.constant 0 : i32
    %c128_i32 = arith.constant 128 : i32
    %7 = arith.muli %c0_i32, %c128_i32 : i32
    %8 = tpu.assume_multiple %7, 128 : i32
    %c0_10 = arith.constant 0 : index
    %9 = arith.index_cast %8 : i32 to index
    %10 = vector.load %arg1[%c0_10, %9] : memref<3x256xf32, #tpu.memory_space<vmem>>, vector<3x128xf32>
    %c0_11 = arith.constant 0 : index
    %11 = arith.index_cast %8 : i32 to index
    %12 = vector.load %arg2[%c0_11, %11] : memref<1x256xf32, #tpu.memory_space<vmem>>, vector<1x128xf32>
    %cst = arith.constant dense<0.000000e+00> : vector<128x128xf32>
    %13 = tpu.matmul %0, %10, %cst {dimension_numbers = #tpu.dot_dimension_numbers<[1], [0], [0], [1], [0, 0, 1, 1], [], []>} : vector<128x3xf32>, vector<3x128xf32>, vector<128x128xf32> -> vector<128x128xf32>
    %14 = vector.broadcast %1 : vector<128x1xf32> to vector<128x128xf32>
    %15 = vector.broadcast %12 : vector<1x128xf32> to vector<128x128xf32>
    %16 = arith.mulf %14, %15 : vector<128x128xf32>
    %17 = arith.addf %13, %16 : vector<128x128xf32>
    %18 = vector.broadcast %2 : vector<128x1xf32> to vector<128x128xf32>
    %19 = arith.addf %17, %18 : vector<128x128xf32>
    %cst_12 = arith.constant 0.000000e+00 : f32
    %20 = vector.broadcast %cst_12 : f32 to vector<128x128xf32>
    %21 = arith.maximumf %19, %20 : vector<128x128xf32>
    %cst_13 = arith.constant dense<0.000000e+00> : vector<32x128xf32>
    %22 = tpu.matmul %6, %21, %cst_13 {dimension_numbers = #tpu.dot_dimension_numbers<[1], [0], [0], [1], [0, 0, 1, 1], [], []>} : vector<32x128xf32>, vector<128x128xf32>, vector<32x128xf32> -> vector<32x128xf32>
    %23 = vector.broadcast %3 : vector<32x1xf32> to vector<32x128xf32>
    %24 = arith.addf %22, %23 : vector<32x128xf32>
    %cst_14 = arith.constant 0.000000e+00 : f32
    %25 = vector.broadcast %cst_14 : f32 to vector<32x128xf32>
    %26 = arith.maximumf %24, %25 : vector<32x128xf32>
    %27 = vector.broadcast %4 : vector<32x1xf32> to vector<32x128xf32>
    %28 = arith.mulf %27, %26 : vector<32x128xf32>
    %cst_15 = arith.constant dense<0.000000e+00> : vector<128xf32>
    %29 = vector.multi_reduction <add>, %28, %cst_15 [0] : vector<32x128xf32> to vector<128xf32>
    %30 = vector.shape_cast %29 : vector<128xf32> to vector<1x128xf32>
    %31 = vector.broadcast %5 : vector<1x1xf32> to vector<1x128xf32>
    %32 = arith.addf %30, %31 : vector<1x128xf32>
    %c0_16 = arith.constant 0 : index
    %33 = arith.index_cast %8 : i32 to index
    %34 = vector.load %arg6[%c0_16, %33] : memref<1x256xf32, #tpu.memory_space<vmem>>, vector<1x128xf32>
    tpu.vector_store %arg6[%c0_16, %33], %32 {strides = array<i32>} : memref<1x256xf32, #tpu.memory_space<vmem>>, vector<1x128xf32>,
    %c1_i32 = arith.constant 1 : i32
    %c128_i32_17 = arith.constant 128 : i32
    %35 = arith.muli %c1_i32, %c128_i32_17 : i32
    %36 = tpu.assume_multiple %35, 128 : i32
    %c0_18 = arith.constant 0 : index
    %37 = arith.index_cast %36 : i32 to index
    %38 = vector.load %arg1[%c0_18, %37] : memref<3x256xf32, #tpu.memory_space<vmem>>, vector<3x128xf32>
    %c0_19 = arith.constant 0 : index
    %39 = arith.index_cast %36 : i32 to index
    %40 = vector.load %arg2[%c0_19, %39] : memref<1x256xf32, #tpu.memory_space<vmem>>, vector<1x128xf32>
    %cst_20 = arith.constant dense<0.000000e+00> : vector<128x128xf32>
    %41 = tpu.matmul %0, %38, %cst_20 {dimension_numbers = #tpu.dot_dimension_numbers<[1], [0], [0], [1], [0, 0, 1, 1], [], []>} : vector<128x3xf32>, vector<3x128xf32>, vector<128x128xf32> -> vector<128x128xf32>
    %42 = vector.broadcast %1 : vector<128x1xf32> to vector<128x128xf32>
    %43 = vector.broadcast %40 : vector<1x128xf32> to vector<128x128xf32>
    %44 = arith.mulf %42, %43 : vector<128x128xf32>
    %45 = arith.addf %41, %44 : vector<128x128xf32>
    %46 = vector.broadcast %2 : vector<128x1xf32> to vector<128x128xf32>
    %47 = arith.addf %45, %46 : vector<128x128xf32>
    %cst_21 = arith.constant 0.000000e+00 : f32
    %48 = vector.broadcast %cst_21 : f32 to vector<128x128xf32>
    %49 = arith.maximumf %47, %48 : vector<128x128xf32>
    %cst_22 = arith.constant dense<0.000000e+00> : vector<32x128xf32>
    %50 = tpu.matmul %6, %49, %cst_22 {dimension_numbers = #tpu.dot_dimension_numbers<[1], [0], [0], [1], [0, 0, 1, 1], [], []>} : vector<32x128xf32>, vector<128x128xf32>, vector<32x128xf32> -> vector<32x128xf32>
    %51 = vector.broadcast %3 : vector<32x1xf32> to vector<32x128xf32>
    %52 = arith.addf %50, %51 : vector<32x128xf32>
    %cst_23 = arith.constant 0.000000e+00 : f32
    %53 = vector.broadcast %cst_23 : f32 to vector<32x128xf32>
    %54 = arith.maximumf %52, %53 : vector<32x128xf32>
    %55 = vector.broadcast %4 : vector<32x1xf32> to vector<32x128xf32>
    %56 = arith.mulf %55, %54 : vector<32x128xf32>
    %cst_24 = arith.constant dense<0.000000e+00> : vector<128xf32>
    %57 = vector.multi_reduction <add>, %56, %cst_24 [0] : vector<32x128xf32> to vector<128xf32>
    %58 = vector.shape_cast %57 : vector<128xf32> to vector<1x128xf32>
    %59 = vector.broadcast %5 : vector<1x1xf32> to vector<1x128xf32>
    %60 = arith.addf %58, %59 : vector<1x128xf32>
    %c0_25 = arith.constant 0 : index
    %61 = arith.index_cast %36 : i32 to index
    %62 = vector.load %arg6[%c0_25, %61] : memref<1x256xf32, #tpu.memory_space<vmem>>, vector<1x128xf32>
    tpu.vector_store %arg6[%c0_25, %61], %60 {strides = array<i32>} : memref<1x256xf32, #tpu.memory_space<vmem>>, vector<1x128xf32>,
    %c2_i32 = arith.constant 2 : i32
    return
  }
  func.func @transform_0(%arg0: i32) -> (i32, i32) {
    %c0_i32 = arith.constant 0 : i32
    %c0_i32_0 = arith.constant 0 : i32
    return %c0_i32, %arg0 : i32, i32
  }
  func.func @transform_1(%arg0: i32) -> (i32, i32) {
    %c0_i32 = arith.constant 0 : i32
    %c0_i32_0 = arith.constant 0 : i32
    return %c0_i32, %arg0 : i32, i32
  }
  func.func @transform_2(%arg0: i32) -> (i32, i32) {
    %c0_i32 = arith.constant 0 : i32
    %c0_i32_0 = arith.constant 0 : i32
    %c0_i32_1 = arith.constant 0 : i32
    return %c0_i32, %c0_i32_0 : i32, i32
  }
  func.func @transform_3(%arg0: i32) -> (i32, i32) {
    %c0_i32 = arith.constant 0 : i32
    %c0_i32_0 = arith.constant 0 : i32
    %c0_i32_1 = arith.constant 0 : i32
    return %c0_i32, %c0_i32_0 : i32, i32
  }
  func.func @transform_4(%arg0: i32) -> (i32, i32) {
    %c0_i32 = arith.constant 0 : i32
    %c0_i32_0 = arith.constant 0 : i32
    %c0_i32_1 = arith.constant 0 : i32
    return %c0_i32, %c0_i32_0 : i32, i32
  }
  func.func @transform_5(%arg0: i32) -> (i32, i32) {
    %c0_i32 = arith.constant 0 : i32
    %c0_i32_0 = arith.constant 0 : i32
    return %c0_i32, %arg0 : i32, i32
  }
}

</mosaic_0001>

<bundles_post_ra>
// kernel: tpu_custom_call.1
= control target key start
LH: loop header
LB: loop body
LE: loop exit
PB: predicated region body
PF: predicated region fallthrough
CT: control target
= control target key end

     0   :  { %10 = vsyncpa [#allocation3], 0  ;;  %s2190_s0 = inlined_call_operand.vmem [shape: f32[3,1024], index: 0, kind: input, shape index: {}]   ;;  %s2191_s1 = inlined_call_operand.vmem [shape: f32[1,1024], index: 1, kind: input, shape index: {}]   ;;  %s2192_s2 = inlined_call_operand.vmem [shape: f32[128,4], index: 2, kind: input, shape index: {}]   ;;  %s2193_s3 = inlined_call_operand.vmem [shape: f32[32,128], index: 3, kind: input, shape index: {}]   ;;  %s2194_s4 = inlined_call_operand.vmem [shape: f32[128,4], index: 4, kind: input, shape index: {}]   ;;  %s2195_s5 = inlined_call_operand.hbm [shape: f32[1,1024], index: 5, kind: output, shape index: {}]  }
   0x1   :  { %12 = vsyncpa [#allocation3 + $0x1], 0  ;;  %s1656_s18 = smov 0   ;;  %s1658_s19 = smov 0  }
   0x2   :  { %s1660_s20 = smov 0   ;;  %s1662_s21 = smov 0  }
   0x3 LB: > { %s1677_s22 = sadd.s32 4294967295, %s1619_s21   ;;  %s1219_s23 = sadd.s32 4294967294, %s1619_s21   ;;  %s1619_s21 = sphi %s1662_s21, %s2203_s21   ;;  %s1615_s20 = sphi %s1660_s20, %s2202_s20   ;;  %s1611_s19 = sphi %s1658_s19, %s2201_s19   ;;  %s1607_s18 = sphi %s1656_s18, %s2200_s18  }
   0x4   : > { %s1681_s24 = sadd.s32 1, %s1619_s21   ;;  %s140_s25 = sadd.s32 1, %s1615_s20 }
   0x5   : > { %s137_s26 = ssub.s32 %s1619_s21, %s1681_s24  ;;  %p150_p0 = scmp.ne.s32.totalorder %s1615_s20, %s1611_s19 }
   0x6   : > { %p138_p1 = scmp.eq.s32.totalorder %s137_s26, 0  ;;  %p151_p2 = scmp.eq.s32.totalorder %s1677_s22, 3 }
   0x7   : > { %p156_p3 = scmp.ne.s32.totalorder %s1611_s19, %s1607_s18  ;;  %p157_p4 = scmp.eq.s32.totalorder %s1219_s23, 3 }
   0x8   : > { %s1692_s27 = scalar_select %p138_p1, %s1615_s20, %s140_s25  }
   0x9   : > { %p1694_p5 = por %p151_p2, %p150_p0  ;;  %p1698_p6 = por %p157_p4, %p156_p3 }
   0xa   : > { %p1222_p7 = scmp.ge.s32.totalorder %s1619_s21, 1  ;;  %p201_p8 = scmp.lt.s32.totalorder %s1619_s21, 5 }
   0xc   : > { %p202_p9 = pnand %p1222_p7, %p201_p8 }
   0xd   : > { %s1224_s30 = sshll.u32 (!%p202_p9), %s1677_s22, 1  ;;  %s230_s11 = sand.u32 (!%p202_p9), 1, %s1611_s19  }
   0xe   : > { %205 = sbr.rel (%p202_p9) target bundleno = 552 (0x228), region = 40  ;;  %p234_p10 = scmp.lt.s32.totalorder (!%p202_p9), %s1224_s30, 7 }
   0xf   : > { %s1223_s12 = sshll.u32 (!%p202_p9), %s230_s11, 1 }
  0x10   : > { %s2146_s13 = scalar_lea.vmem (!%p202_p9), [#allocation2], %s1223_s12 }
  0x11   : > { %s1151_s15 = sshll.u32 (!%p202_p9), %s2146_s13, 4  ;;  %s1152_s15 = int_to_ptr.vmem [resolvable:$true] %s1151_s15 }
  0x13   : > { %v1708_v0 = vld [vmem:[%s2192_s2] sm:$0xff]  ;;  %vm386_vm0 = vcmask 23552   ;;  %v1621_v1 = vmov 3   ;;  %v1716_v2 = vld [vmem:[%s2192_s2 + $0x78] sm:$0xff]  ;;  %v1722_v3 = vld [vmem:[%s2192_s2 + $0x68] sm:$0xff]  ;;  %s2205_s30 = smov (!%p234_p10, %s1224_s30), 7 }
  0x14   : > { %1348 = vmatprep.mubr.msk.f32.mxu0 %vm386_vm0, %v1708_v0  ;;  %1549 = vset.pattern.permute.xlu0 %v1621_v1  ;;  %v1731_v4 = vld [vmem:[%s2192_s2 + $0x70] sm:$0xff]  ;;  %s1225_s14 = sshll.u32 %s2205_s30, 2  ;;  %vm419_vm1 = vcmask 1042432   ;;  %v276_v5 = vld [vmem:[%s2194_s4 + $0x78] sm:$0xff]  ;;  %v1743_v8 = vld [vmem:[%s2192_s2 + $0x8] sm:$0xff]  ;;  %v1622_v9 = vmov 0   ;;  %s1953_s26 = scalar_lea.vmem %s2191_s1, %s2205_s30 }
  0x15   : > { %1550 = vset.pattern.permute.xlu1 %v1621_v1  ;;  %361 = vperm.xlu0 %1549, %v1716_v2   ;;  %s237_s25 = scalar_lea.vmem %s2190_s0, %s1225_s14  ;;  %v1751_v10 = vld [vmem:[%s2192_s2 + $0x10] sm:$0xff]  ;;  %v1757_v11 = vld [vmem:[%s2192_s2 + $0x60] sm:$0xff]  ;;  %v248_v13 = vld [vmem:[%s2192_s2 + $0x18] sm:$0xff]  ;;  %v1623_v41 = vmov 1   ;;  %v1624_v44 = vmov 2   ;;  %s1271_s14 = sshll.u32 %s1677_s22, 5 }
  0x16   : > { %351 = vperm.xlu1 %1550, %v1722_v3   ;;  %v282_v6 = vld [vmem:[%s237_s25] sm:$0x7]  ;;  %v1245_v7 = vld [vmem:[%s237_s25 + $0x4] sm:$0x7]  ;;  %v275_v12 = vld [vmem:[%s2194_s4 + $0x70] sm:$0xff]  ;;  %s1149_s23 = scalar_lea.hbm %s2195_s5, %s1271_s14  ;;  %s1137_s25 = scalar_lea.sflag [#allocation3], %s230_s11 }
  0x17   : > { %1346 = vmatprep.subr.msk.mxu0 %vm419_vm1, %v282_v6  ;;  %v249_v14 = vld [vmem:[%s2192_s2 + $0x20] sm:$0xff]  ;;  %v274_v15 = vld [vmem:[%s2194_s4 + $0x68] sm:$0xff]  ;;  %v1786_v17 = vld [vmem:[%s2192_s2 + $0x58] sm:$0xff]  ;;  %s1625_s30 = smov [#allocation2]  }
  0x18   : > { %1347 = vmatpush3.msk.msra.mxu0 %vm419_vm1, %v282_v6  ;;  %v250_v16 = vld [vmem:[%s2192_s2 + $0x28] sm:$0xff]  ;;  %v251_v18 = vld [vmem:[%s2192_s2 + $0x30] sm:$0xff]  ;;  %v273_v19 = vld [vmem:[%s2194_s4 + $0x60] sm:$0xff]  ;;  %s1563_s22 = sshll.u32 %s1625_s30, 4  ;;  %s1564_s22 = int_to_ptr.vmem [resolvable:$false] %s1563_s22 }
  0x19   : > { %356 = vperm.xlu0 %1549, %v1731_v4   ;;  %1349 = vmatmul.mubr.msk.f32.vlgmr.msra.gmra.mxu0 %vm386_vm0, %v1743_v8  ;;  %v252_v20 = vld [vmem:[%s2192_s2 + $0x38] sm:$0xff]  ;;  %v255_v21 = vld [vmem:[%s2192_s2 + $0x50] sm:$0xff]  ;;  %v253_v22 = vld [vmem:[%s2192_s2 + $0x40] sm:$0xff]  ;;  %s1565_s6 = scalar_lea.vmem %s1564_s22, 64  ;;  %p1566_p0 = scmp.lt.s32.totalorder %s1152_s15, %s1564_s22 }
  0x1a   : > { %1551 = vset.pattern.permute.xlu1 %v1622_v9  ;;  %1410 = vmatprep.subr.msk.mxu0 %vm419_vm1, %v1245_v7  ;;  %v272_v23 = vld [vmem:[%s2194_s4 + $0x58] sm:$0xff]  ;;  %v254_v24 = vld [vmem:[%s2192_s2 + $0x48] sm:$0xff]  ;;  %v271_v25 = vld [vmem:[%s2194_s4 + $0x50] sm:$0xff] }
  0x1b   : > { %645 = vperm.xlu1 %1551, %v276_v5   ;;  %1411 = vmatpush3.msk.msra.mxu0 %vm419_vm1, %v1245_v7  ;;  %v270_v26 = vld [vmem:[%s2194_s4 + $0x48] sm:$0xff]  ;;  %v269_v27 = vld [vmem:[%s2194_s4 + $0x40] sm:$0xff]  ;;  %v268_v28 = vld [vmem:[%s2194_s4 + $0x38] sm:$0xff] }
  0x1c   : > { %1351 = vmatprep.mubr.msk.f32.mxu0 %vm386_vm0, %v1751_v10  ;;  %v267_v29 = vld [vmem:[%s2194_s4 + $0x30] sm:$0xff]  ;;  %v266_v30 = vld [vmem:[%s2194_s4 + $0x28] sm:$0xff]  ;;  %v265_v31 = vld [vmem:[%s2194_s4 + $0x20] sm:$0xff] }
  0x1d   : > { %346 = vperm.xlu0 %1549, %v1757_v11   ;;  %1352 = vmatmul.mubr.msk.f32.gmra.mxu0 %vm386_vm0, %v248_v13  ;;  %v264_v32 = vld [vmem:[%s2194_s4 + $0x18] sm:$0xff]  ;;  %v263_v33 = vld [vmem:[%s2194_s4 + $0x10] sm:$0xff]  ;;  %v261_v34 = vld [vmem:[%s2194_s4] sm:$0xff] }
  0x1e   : > { %1354 = vmatprep.mubr.msk.f32.mxu0 %vm386_vm0, %v249_v14  ;;  %v262_v35 = vld [vmem:[%s2194_s4 + $0x8] sm:$0xff]  ;;  %v278_v36 = vld [vmem:[%s2193_s3] sm:$0xff] }
  0x1f   : > { %640 = vperm.xlu1 %1551, %v275_v12   ;;  %1404 = vmatprep.mubr.f32.mxu1 %v278_v36  ;;  %v277_v50 = vld [vmem:[%s2194_s4] sm:$0x1] }
  0x21   : > { %341 = vperm.xlu0 %1549, %v1786_v17   ;;  %1355 = vmatmul.mubr.msk.f32.gmra.mxu0 %vm386_vm0, %v250_v16 }
  0x22   : > { %1357 = vmatprep.mubr.msk.f32.mxu0 %vm386_vm0, %v251_v18 }
  0x23   : > { %635 = vperm.xlu1 %1551, %v274_v15  }
  0x25   : > { %336 = vperm.xlu0 %1549, %v255_v21   ;;  %1358 = vmatmul.mubr.msk.f32.gmra.mxu0 %vm386_vm0, %v252_v20 }
  0x26   : > { %1360 = vmatprep.mubr.msk.f32.mxu0 %vm386_vm0, %v253_v22 }
  0x27   : > { %630 = vperm.xlu1 %1551, %v273_v19  }
  0x29   : > { %331 = vperm.xlu0 %1549, %v254_v24   ;;  %1361 = vmatmul.mubr.msk.f32.gmra.mxu0 %vm386_vm0, %v254_v24 }
  0x2a   : > { %1363 = vmatprep.mubr.msk.f32.mxu0 %vm386_vm0, %v255_v21 }
  0x2b   : > { %625 = vperm.xlu1 %1551, %v272_v23  }
  0x2d   : > { %326 = vperm.xlu0 %1549, %v253_v22   ;;  %1364 = vmatmul.mubr.msk.f32.gmra.mxu0 %vm386_vm0, %v1786_v17 }
  0x2e   : > { %1366 = vmatprep.mubr.msk.f32.mxu0 %vm386_vm0, %v1757_v11 }
  0x2f   : > { %620 = vperm.xlu1 %1551, %v271_v25  }
  0x31   : > { %321 = vperm.xlu0 %1549, %v252_v20   ;;  %1367 = vmatmul.mubr.msk.f32.gmra.mxu0 %vm386_vm0, %v1722_v3 }
  0x32   : > { %1369 = vmatprep.mubr.msk.f32.mxu0 %vm386_vm0, %v1731_v4 }
  0x33   : > { %615 = vperm.xlu1 %1551, %v270_v26  }
  0x35   : > { %316 = vperm.xlu0 %1549, %v251_v18   ;;  %1370 = vmatmul.mubr.msk.f32.gmra.mxu0 %vm386_vm0, %v1716_v2 }
  0x36   : > { %1412 = vmatprep.mubr.msk.f32.mxu0 %vm386_vm0, %v1708_v0 }
  0x37   : > { %610 = vperm.xlu1 %1551, %v269_v27  }
  0x39   : > { %311 = vperm.xlu0 %1549, %v250_v16   ;;  %1413 = vmatmul.mubr.msk.f32.vlgmr.msra.gmra.mxu0 %vm386_vm0, %v1743_v8 }
  0x3a   : > { %1415 = vmatprep.mubr.msk.f32.mxu0 %vm386_vm0, %v1751_v10 }
  0x3b   : > { %605 = vperm.xlu1 %1551, %v268_v28  }
  0x3d   : > { %306 = vperm.xlu0 %1549, %v249_v14   ;;  %1416 = vmatmul.mubr.msk.f32.gmra.mxu0 %vm386_vm0, %v248_v13 }
  0x3e   : > { %1418 = vmatprep.mubr.msk.f32.mxu0 %vm386_vm0, %v249_v14 }
  0x3f   : > { %600 = vperm.xlu1 %1551, %v267_v29  }
  0x41   : > { %301 = vperm.xlu0 %1549, %v248_v13   ;;  %1419 = vmatmul.mubr.msk.f32.gmra.mxu0 %vm386_vm0, %v250_v16 }
  0x42   : > { %1421 = vmatprep.mubr.msk.f32.mxu0 %vm386_vm0, %v251_v18 }
  0x43   : > { %595 = vperm.xlu1 %1551, %v266_v30  }
  0x45   : > { %296 = vperm.xlu0 %1549, %v1751_v10   ;;  %1422 = vmatmul.mubr.msk.f32.gmra.mxu0 %vm386_vm0, %v252_v20 }
  0x46   : > { %1424 = vmatprep.mubr.msk.f32.mxu0 %vm386_vm0, %v253_v22 }
  0x47   : > { %590 = vperm.xlu1 %1551, %v265_v31  }
  0x49   : > { %291 = vperm.xlu0 %1549, %v1743_v8   ;;  %1425 = vmatmul.mubr.msk.f32.gmra.mxu0 %vm386_vm0, %v254_v24  ;;  %v1956_v8 = vld [vmem:[%s1953_s26] ss:$0 sm:$0xff] }
  0x4a   : > { %1427 = vmatprep.mubr.msk.f32.mxu0 %vm386_vm0, %v255_v21 }
  0x4b   : > { %585 = vperm.xlu1 %1551, %v264_v32  }
  0x4d   : > { %286 = vperm.xlu0 %1549, %v1708_v0   ;;  %1428 = vmatmul.mubr.msk.f32.gmra.mxu0 %vm386_vm0, %v1786_v17 }
  0x4e   : > { %1430 = vmatprep.mubr.msk.f32.mxu0 %vm386_vm0, %v1757_v11 }
  0x4f   : > { %580 = vperm.xlu1 %1551, %v263_v33  }
  0x51   : > { %1552 = vset.pattern.permute.xlu0 %v1622_v9  ;;  %1431 = vmatmul.mubr.msk.f32.gmra.mxu0 %vm386_vm0, %v1722_v3 }
  0x52   : > { %575 = vperm.xlu0 %1552, %v262_v35   ;;  %1433 = vmatprep.mubr.msk.f32.mxu0 %vm386_vm0, %v1731_v4 }
  0x53   : > { %570 = vperm.xlu1 %1551, %v261_v34  }
  0x55   : > { %1434 = vmatmul.mubr.msk.f32.gmra.mxu0 %vm386_vm0, %v1716_v2 }
  0x56   : > { %1468 = vmatprep.mubr.f32.mxu0 %v278_v36  ;;  %1554 = vset.pattern.permute.xlu0 %v1623_v41 }
  0x57   : > { %1553 = vset.pattern.permute.xlu1 %v1623_v41  ;;  %685 = vperm.xlu0 %1554, %v262_v35  }
  0x58   : > { %681 = vperm.xlu1 %1553, %v261_v34  }
  0x5b   : > { %1555 = vset.pattern.permute.xlu0 %v1624_v44 }
  0x5c   : > { %689 = vperm.xlu1 %1553, %v263_v33   ;;  %786 = vperm.xlu0 %1555, %v261_v34  }
  0x60   : > { %693 = vperm.xlu1 %1553, %v264_v32   ;;  %798 = vperm.xlu0 %1555, %v264_v32  }
  0x64   : > { %1556 = vset.pattern.permute.xlu1 %v1624_v44  ;;  %1558 = vset.pattern.permute.xlu0 %v1621_v1 }
  0x65   : > { %790 = vperm.xlu1 %1556, %v262_v35  }
  0x69   : > { %794 = vperm.xlu1 %1556, %v263_v33  }
  0x6d   : > { %1557 = vset.pattern.permute.xlu1 %v1621_v1 }
  0x6e   : > { %816 = vperm.xlu1 %1557, %v277_v50  }
  0x90   : > { %v1890_v37 = vpop.permute.xlu0 %361 }
  0x91   : > { %v1892_v38 = vpop.permute.xlu1 %351  ;;  %v385_v13 = vmul.f32 %v1956_v8, %v1890_v37 }
  0x92   : > { %v383_v14 = vmul.f32 %v1956_v8, %v1892_v38 }
  0x94   : > { %v1894_v39 = vpop.permute.xlu0 %356 }
  0x95   : > { %v384_v16 = vmul.f32 %v1956_v8, %v1894_v39 }
  0x96   : > { %v1896_v40 = vpop.permute.xlu1 %645 }
  0x98   : > { %v1898_v42 = vpop.permute.xlu0 %346 }
  0x99   : > { %v382_v17 = vmul.f32 %v1956_v8, %v1898_v42 }
  0x9a   : > { %v1900_v43 = vpop.permute.xlu1 %640 }
  0x9c   : > { %v1902_v45 = vpop.permute.xlu0 %341 }
  0x9d   : > { %v381_v22 = vmul.f32 %v1956_v8, %v1902_v45 }
  0x9e   : > { %v1904_v46 = vpop.permute.xlu1 %635 }
  0xa0   : > { %v1906_v47 = vpop.permute.xlu0 %336 }
  0xa1   : > { %v380_v26 = vmul.f32 %v1956_v8, %v1906_v47 }
  0xa2   : > { %v1909_v48 = vpop.permute.xlu1 %630 }
  0xa4   : > { %v1911_v49 = vpop.permute.xlu0 %331 }
  0xa5   : > { %v379_v34 = vmul.f32 %v1956_v8, %v1911_v49 }
  0xa6   : > { %v1916_v51 = vpop.permute.xlu1 %625 }
  0xa8   : > { %v1919_v52 = vpop.permute.xlu0 %326 }
  0xaa   : > { %v1923_v54 = vpop.permute.xlu1 %620 }
  0xac   : > { %v1929_v57 = vpop.permute.xlu0 %321 }
  0xae   : > { %v1933_v59 = vpop.permute.xlu1 %615 }
  0xb0   : > { %v1939_v62 = vpop.permute.xlu0 %316 }
  0xb2   : > { %v1941_v0 = vpop.permute.xlu1 %610 }
  0xb4   : > { %v1945_v3 = vpop.permute.xlu0 %311 }
  0xb6   : > { %v1947_v5 = vpop.permute.xlu1 %605 }
  0xb8   : > { %v1958_v9 = vpop.permute.xlu0 %306 }
  0xba   : > { %v1960_v11 = vpop.permute.xlu1 %600 }
  0xbc   : > { %v1970_v20 = vpop.permute.xlu0 %301 }
  0xbe   : > { %v1977_v27 = vpop.permute.xlu1 %595 }
  0xc0   : > { %v1988_v44 = vpop.permute.xlu0 %296 }
  0xd9   : > { %v1921_v53 = vpop.f32.mrf.mxu0 }
  0xdb   : > { %v1925_v55 = vpop.f32.mrf.mxu0 }
  0xdd   : > { %v1927_v56 = vpop.f32.mrf.mxu0 }
  0xdf   : > { %v1931_v58 = vpop.f32.mrf.mxu0 }
  0xe1   : > { %v1935_v60 = vpop.f32.mrf.mxu0 }
  0xe3   : > { %v1937_v61 = vpop.f32.mrf.mxu0 }
  0xe5   : > { %v1359_v63 = vpop.f32.mrf.mxu0 }
  0xe7   : > { %v1943_v1 = vpop.f32.mrf.mxu0 }
  0xe9   : > { %v1362_v2 = vpop.f32.mrf.mxu0 }
  0xeb   : > { %v529_v4 = vpop.f32.mrf.mxu0 }
  0xed   : > { %v1365_v6 = vpop.f32.mrf.mxu0 }
  0xee   : > { %v545_v29 = vadd.f32 %v1365_v6, %v381_v22  ;;  %v378_v6 = vmul.f32 %v1956_v8, %v1919_v52 }
  0xef   : > { %v539_v7 = vpop.f32.mrf.mxu0 }
  0xf0   : > { %v540_v35 = vadd.f32 %v539_v7, %v380_v26 }
  0xf1   : > { %v1368_v10 = vpop.f32.mrf.mxu0 }
  0xf2   : > { %v555_v18 = vadd.f32 %v1368_v10, %v383_v14  ;;  %v535_v10 = vadd.f32 %v1362_v2, %v379_v34  ;;  %v1995_v14 = vpop.permute.xlu1 %590  ;;  %v376_v2 = vmul.f32 %v1956_v8, %v1939_v62 }
  0xf3   : > { %v549_v12 = vpop.f32.mrf.mxu0 }
  0xf4   : > { %v550_v23 = vadd.f32 %v549_v12, %v382_v17  ;;  %v661_v30 = vadd.f32 %v1904_v46, %v555_v18  ;;  %v659_v12 = vadd.f32 %v1916_v51, %v545_v29  ;;  %v658_v17 = vadd.f32 %v1923_v54, %v540_v35 }
  0xf5   : > { %v1371_v15 = vpop.f32.mrf.mxu0  ;;  %v657_v22 = vadd.f32 %v1933_v59, %v535_v10  ;;  %v520_v26 = vadd.f32 %v1943_v1, %v376_v2 }
  0xf6   : > { %v565_v19 = vadd.f32 %v1371_v15, %v385_v13  ;;  %v660_v36 = vadd.f32 %v1909_v48, %v550_v23  ;;  %v677_v13 = vmax.f32 %v661_v30, 0.0  ;;  %v377_v15 = vmul.f32 %v1956_v8, %v1929_v57 }
  0xf7   : > { %v559_v21 = vpop.f32.mrf.mxu0  ;;  %v675_v23 = vmax.f32 %v659_v12, 0.0  ;;  %v674_v30 = vmax.f32 %v658_v17, 0.0  ;;  %v654_v10 = vadd.f32 %v1960_v11, %v520_v26 }
  0xf8   : > { %v560_v24 = vadd.f32 %v559_v21, %v384_v16  ;;  %v663_v25 = vadd.f32 %v1896_v40, %v565_v19  ;;  %v530_v16 = vadd.f32 %v529_v4, %v378_v6  ;;  %v676_v18 = vmax.f32 %v660_v36, 0.0 }
  0xf9   : > { %v1979_v28 = vpop.f32.mrf.mxu0  ;;  %v525_v21 = vadd.f32 %v1359_v63, %v377_v15  ;;  %v375_v4 = vmul.f32 %v1956_v8, %v1945_v3  ;;  %v673_v36 = vmax.f32 %v657_v22, 0.0  ;;  %v670_v26 = vmax.f32 %v654_v10, 0.0 }
  0xfa   : > { %v662_v31 = vadd.f32 %v1900_v43, %v560_v24  ;;  %v679_v32 = vmax.f32 %v663_v25, 0.0  ;;  %v2007_v24 = vpop.permute.xlu0 %291  ;;  %v656_v29 = vadd.f32 %v1941_v0, %v530_v16 }
  0xfb   : > { %v1983_v33 = vpop.f32.mrf.mxu0  ;;  %v515_v34 = vadd.f32 %v1935_v60, %v375_v4  ;;  %v655_v35 = vadd.f32 %v1947_v5, %v525_v21  ;;  %v371_v16 = vmul.f32 %v1956_v8, %v2007_v24 }
  0xfc   : > { %v678_v41 = vmax.f32 %v662_v31, 0.0  ;;  %1372 = vmatprep.subr.mxu1 %v679_v32  ;;  %v2015_v31 = vpop.permute.xlu1 %585  ;;  %v672_v12 = vmax.f32 %v656_v29, 0.0 }
  0xfd   : > { %1373 = vmatpush3.msra.mxu1 %v679_v32  ;;  %v1990_v50 = vpop.f32.mrf.mxu0  ;;  %v374_v32 = vmul.f32 %v1956_v8, %v1958_v9  ;;  %v495_v29 = vadd.f32 %v1921_v53, %v371_v16 }
  0xfe   : > { %1374 = vmatprep.subr.mxu1 %v678_v41  ;;  %v2031_v60 = vpop.permute.xlu0 %286 }
  0xff   : > { %1375 = vmatpush3.msra.mxu1 %v678_v41  ;;  %v1997_v7 = vpop.f32.mrf.mxu0  ;;  %v373_v41 = vmul.f32 %v1956_v8, %v1970_v20  ;;  %v510_v6 = vadd.f32 %v1937_v61, %v374_v32  ;;  %v671_v61 = vmax.f32 %v655_v35, 0.0  ;;  %v370_v22 = vmul.f32 %v1956_v8, %v2031_v60 }
 0x100   : > { %1376 = vmatprep.subr.mxu1 %v677_v13  ;;  %v2039_v2 = vpop.permute.xlu1 %580 }
 0x101   : > { %1377 = vmatpush3.msra.mxu1 %v677_v13  ;;  %v2002_v19 = vpop.f32.mrf.mxu0  ;;  %v372_v13 = vmul.f32 %v1956_v8, %v1988_v44  ;;  %v505_v17 = vadd.f32 %v1927_v56, %v373_v41  ;;  %v652_v4 = vadd.f32 %v1995_v14, %v510_v6  ;;  %v490_v8 = vadd.f32 %v1925_v55, %v370_v22  ;;  %v2054_v41 = vld [vmem:[%s1953_s26 + $0x1] ss:$0 sm:$0xff]  ;;  %s1559_s26 = scalar_lea.vmem %s1152_s15, 32 }
 0x102   : > { %1378 = vmatprep.subr.mxu1 %v676_v18  ;;  %v850_v16 = vmul.f32 %v2054_v41, %v1890_v37  ;;  %v849_v22 = vmul.f32 %v2054_v41, %v1894_v39  ;;  %v2074_v39 = vld [vmem:[%s2193_s3 + $0x8] sm:$0xff]  ;;  %p1560_p11 = scmp.ne.s32.totalorder %s1152_s15, %s1559_s26  ;;  %p1567_p1 = scmp.lt.s32.totalorder %s1565_s6, %s1559_s26 }
 0x103   : > { %1379 = vmatpush3.msra.mxu1 %v676_v18  ;;  %v2009_v25 = vpop.f32.mrf.mxu0  ;;  %v653_v18 = vadd.f32 %v1977_v27, %v515_v34  ;;  %v2049_v34 = vpop.permute.xlu0 %575 }
 0x104   : > { %1380 = vmatprep.subr.mxu1 %v675_v23  ;;  %v2056_v6 = vpop.permute.xlu1 %570  ;;  %v649_v10 = vadd.f32 %v2049_v34, %v495_v29  ;;  %p1561_p12 = pnand %p1560_p11, %p1694_p5  ;;  %p1568_p2 = por %p1567_p1, %p1566_p0 }
 0x105   : > { %1381 = vmatpush3.msra.mxu1 %v675_v23  ;;  %v2017_v63 = vpop.f32.mrf.mxu0  ;;  %v500_v23 = vadd.f32 %v1931_v58, %v372_v13  ;;  %v669_v32 = vmax.f32 %v653_v18, 0.0  ;;  %v648_v55 = vadd.f32 %v2056_v6, %v490_v8  ;;  %v848_v18 = vmul.f32 %v2054_v41, %v1892_v38 }
 0x106   : > { %1382 = vmatprep.subr.mxu1 %v674_v30  ;;  %v846_v38 = vmul.f32 %v2054_v41, %v1902_v45  ;;  %v2084_v45 = vld [vmem:[%s2193_s3 + $0x10] sm:$0xff]  ;;  %p1562_p13 = pneg %p1561_p12 }
 0x107   : > { %1383 = vmatpush3.msra.mxu1 %v674_v30  ;;  %v2023_v1 = vpop.f32.mrf.mxu0  ;;  %v651_v30 = vadd.f32 %v2015_v31, %v505_v17  ;;  %v650_v58 = vadd.f32 %v2039_v2, %v500_v23  ;;  %v665_v23 = vmax.f32 %v649_v10, 0.0 }
 0x108   : > { %1384 = vmatprep.subr.mxu1 %v673_v36  ;;  %p1569_p3 = pnand %p1568_p2, %p1562_p13 }
 0x109   : > { %1385 = vmatpush3.msra.mxu1 %v673_v36  ;;  %v2033_v15 = vpop.f32.mrf.mxu0  ;;  %v668_v36 = vmax.f32 %v652_v4, 0.0  ;;  %v666_v17 = vmax.f32 %v650_v58, 0.0 }
 0x10a   : > { %1386 = vmatprep.subr.mxu1 %v672_v12 }
 0x10b   : > { %1387 = vmatpush3.msra.mxu1 %v672_v12  ;;  %v2041_v21 = vpop.f32.mrf.mxu0  ;;  %v667_v12 = vmax.f32 %v651_v30, 0.0  ;;  %v664_v30 = vmax.f32 %v648_v55, 0.0 }
 0x10c   : > { %1388 = vmatprep.subr.mxu1 %v671_v61 }
 0x10d   : > { %1389 = vmatpush3.msra.mxu1 %v671_v61  ;;  %v1429_v56 = vpop.f32.mrf.mxu0 }
 0x10e   : > { %1390 = vmatprep.subr.mxu1 %v670_v26 }
 0x10f   : > { %1391 = vmatpush3.msra.mxu1 %v670_v26  ;;  %v970_v35 = vpop.f32.mrf.mxu0  ;;  %v847_v26 = vmul.f32 %v2054_v41, %v1898_v42 }
 0x110   : > { %1392 = vmatprep.subr.mxu1 %v669_v32 }
 0x111   : > { %1393 = vmatpush3.msra.mxu1 %v669_v32  ;;  %v1432_v53 = vpop.f32.mrf.mxu0 }
 0x112   : > { %1394 = vmatprep.subr.mxu1 %v668_v36  ;;  %v986_v29 = vadd.f32 %v1432_v53, %v848_v18  ;;  %v845_v53 = vmul.f32 %v2054_v41, %v1906_v47  ;;  %v843_v47 = vmul.f32 %v2054_v41, %v1919_v52 }
 0x113   : > { %1395 = vmatpush3.msra.mxu1 %v668_v36  ;;  %v980_v13 = vpop.f32.mrf.mxu0 }
 0x114   : > { %1396 = vmatprep.subr.mxu1 %v667_v12  ;;  %v981_v58 = vadd.f32 %v980_v13, %v847_v26  ;;  %v1012_v10 = vadd.f32 %v986_v29, %v1904_v46  ;;  %v971_v13 = vadd.f32 %v970_v35, %v845_v53  ;;  %v2092_v46 = vld [vmem:[%s2193_s3 + $0x18] sm:$0xff]  ;;  %v961_v35 = vadd.f32 %v2041_v21, %v843_v47 }
 0x115   : > { %1397 = vmatpush3.msra.mxu1 %v667_v12  ;;  %v1435_v61 = vpop.f32.mrf.mxu0 }
 0x116   : > { %v996_v4 = vadd.f32 %v1435_v61, %v850_v16  ;;  %1398 = vmatprep.subr.mxu1 %v666_v17  ;;  %v1011_v16 = vadd.f32 %v981_v58, %v1909_v48  ;;  %v842_v48 = vmul.f32 %v2054_v41, %v1929_v57  ;;  %v1007_v21 = vadd.f32 %v961_v35, %v1941_v0 }
 0x117   : > { %1399 = vmatpush3.msra.mxu1 %v666_v17  ;;  %v990_v37 = vpop.f32.mrf.mxu0  ;;  %v1009_v17 = vadd.f32 %v971_v13, %v1923_v54  ;;  %v840_v54 = vmul.f32 %v2054_v41, %v1945_v3  ;;  %v838_v0 = vmul.f32 %v2054_v41, %v1970_v20 }
 0x118   : > { %v1014_v32 = vadd.f32 %v996_v4, %v1896_v40  ;;  %v991_v8 = vadd.f32 %v990_v37, %v849_v22  ;;  %1400 = vmatprep.subr.mxu1 %v665_v23  ;;  %v976_v40 = vadd.f32 %v1429_v56, %v846_v38  ;;  %v1027_v18 = vmax.f32 %v1011_v16, 0.0 }
 0x119   : > { %1401 = vmatpush3.msra.mxu1 %v665_v23  ;;  %v956_v52 = vadd.f32 %v2017_v63, %v842_v48  ;;  %v1025_v22 = vmax.f32 %v1009_v17, 0.0  ;;  %v1023_v4 = vmax.f32 %v1007_v21, 0.0 }
 0x11a   : > { %v1030_v36 = vmax.f32 %v1014_v32, 0.0  ;;  %v1013_v42 = vadd.f32 %v991_v8, %v1900_v43  ;;  %1402 = vmatprep.subr.mxu1 %v664_v30  ;;  %v844_v43 = vmul.f32 %v2054_v41, %v1911_v49  ;;  %v1010_v55 = vadd.f32 %v976_v40, %v1916_v51  ;;  %v686_v32 = vpop.permute.xlu0 %685 }
 0x11b   : > { %1403 = vmatpush3.msra.mxu1 %v664_v30  ;;  %v1028_v49 = vmax.f32 %v1012_v10, 0.0  ;;  %v841_v51 = vmul.f32 %v2054_v41, %v1939_v62  ;;  %v946_v62 = vadd.f32 %v2002_v19, %v840_v54  ;;  %v1006_v63 = vadd.f32 %v956_v52, %v1947_v5 }
 0x11c   : > { %v1029_v12 = vmax.f32 %v1013_v42, 0.0  ;;  %1405 = vmatmul.mubr.f32.vlgmr.msra.gmra.mxu1 %v2074_v39  ;;  %1436 = vmatprep.subr.mxu0 %v1030_v36  ;;  %v966_v56 = vadd.f32 %v2033_v15, %v844_v43  ;;  %v1026_v61 = vmax.f32 %v1010_v55, 0.0  ;;  %v837_v5 = vmul.f32 %v2054_v41, %v1988_v44 }
 0x11d   : > { %1474 = vmatprep.subr.mxu1 %v1030_v36  ;;  %1437 = vmatpush3.msra.mxu0 %v1030_v36  ;;  %v951_v57 = vadd.f32 %v2023_v1, %v841_v51  ;;  %v1004_v19 = vadd.f32 %v946_v62, %v1977_v27  ;;  %v1022_v26 = vmax.f32 %v1006_v63, 0.0  ;;  %v835_v27 = vmul.f32 %v2054_v41, %v2031_v60 }
 0x11e   : > { %1490 = vmatpush3.msra.mxu1 %v1030_v36  ;;  %1438 = vmatprep.subr.mxu0 %v1029_v12  ;;  %v1008_v15 = vadd.f32 %v966_v56, %v1933_v59  ;;  %v839_v59 = vmul.f32 %v2054_v41, %v1958_v9  ;;  %v936_v9 = vadd.f32 %v1990_v50, %v838_v0  ;;  %v787_v40 = vpop.permute.xlu0 %786  ;;  %v820_v54 = vlaneseq }
 0x11f   : > { %1475 = vmatprep.subr.mxu1 %v1029_v12  ;;  %1407 = vmatprep.mubr.f32.mxu1 %v2084_v45  ;;  %v1005_v1 = vadd.f32 %v951_v57, %v1960_v11  ;;  %v836_v11 = vmul.f32 %v2054_v41, %v2007_v24  ;;  %v931_v20 = vadd.f32 %v1997_v7, %v837_v5  ;;  %v1020_v37 = vmax.f32 %v1004_v19, 0.0 }
 0x120   : > { %1439 = vmatpush3.msra.mxu0 %v1029_v12  ;;  %1491 = vmatpush3.msra.mxu1 %v1029_v12  ;;  %v1024_v23 = vmax.f32 %v1008_v15, 0.0  ;;  %v941_v3 = vadd.f32 %v2009_v25, %v839_v59  ;;  %v1002_v50 = vadd.f32 %v936_v9, %v2015_v31  ;;  %v921_v7 = vadd.f32 %v1983_v33, %v835_v27 }
 0x121   : > { %1408 = vmatmul.mubr.f32.gmra.mxu1 %v2092_v46  ;;  %1440 = vmatprep.subr.mxu0 %v1028_v49  ;;  %v1021_v29 = vmax.f32 %v1005_v1, 0.0  ;;  %v926_v44 = vadd.f32 %v1979_v28, %v836_v11  ;;  %vm2142_vm2 = vcmp.lt.s32.totalorder %v820_v54, 128 }
 0x122   : > { %1476 = vmatprep.subr.mxu1 %v1028_v49  ;;  %1441 = vmatpush3.msra.mxu0 %v1028_v49  ;;  %v1003_v25 = vadd.f32 %v941_v3, %v1995_v14  ;;  %v1001_v14 = vadd.f32 %v931_v20, %v2039_v2  ;;  %v1018_v41 = vmax.f32 %v1002_v50, 0.0  ;;  %v999_v28 = vadd.f32 %v921_v7, %v2056_v6  ;;  %v799_v56 = vpop.permute.xlu0 %798 }
 0x123   : > { %1492 = vmatpush3.msra.mxu1 %v1028_v49  ;;  %1442 = vmatprep.subr.mxu0 %v1027_v18  ;;  %v1000_v60 = vadd.f32 %v926_v44, %v2049_v34  ;;  %v682_v34 = vpop.permute.xlu1 %681 }
 0x124   : > { %1477 = vmatprep.subr.mxu1 %v1027_v18  ;;  %1443 = vmatpush3.msra.mxu0 %v1027_v18  ;;  %v1019_v24 = vmax.f32 %v1003_v25, 0.0  ;;  %v1017_v31 = vmax.f32 %v1001_v14, 0.0  ;;  %v1015_v2 = vmax.f32 %v999_v28, 0.0 }
 0x125   : > { %1493 = vmatpush3.msra.mxu1 %v1027_v18  ;;  %1444 = vmatprep.subr.mxu0 %v1026_v61  ;;  %v1016_v33 = vmax.f32 %v1000_v60, 0.0 }
 0x126   : > { %1478 = vmatprep.subr.mxu1 %v1026_v61  ;;  %1445 = vmatpush3.msra.mxu0 %v1026_v61 }
 0x127   : > { %1494 = vmatpush3.msra.mxu1 %v1026_v61  ;;  %1446 = vmatprep.subr.mxu0 %v1025_v22  ;;  %v690_v6 = vpop.permute.xlu1 %689 }
 0x128   : > { %1479 = vmatprep.subr.mxu1 %v1025_v22  ;;  %1447 = vmatpush3.msra.mxu0 %v1025_v22 }
 0x129   : > { %1495 = vmatpush3.msra.mxu1 %v1025_v22  ;;  %1448 = vmatprep.subr.mxu0 %v1024_v23 }
 0x12a   : > { %1480 = vmatprep.subr.mxu1 %v1024_v23  ;;  %1449 = vmatpush3.msra.mxu0 %v1024_v23 }
 0x12b   : > { %1496 = vmatpush3.msra.mxu1 %v1024_v23  ;;  %1450 = vmatprep.subr.mxu0 %v1023_v4  ;;  %v694_v30 = vpop.permute.xlu1 %693 }
 0x12c   : > { %1481 = vmatprep.subr.mxu1 %v1023_v4  ;;  %1451 = vmatpush3.msra.mxu0 %v1023_v4 }
 0x12d   : > { %1497 = vmatpush3.msra.mxu1 %v1023_v4  ;;  %1452 = vmatprep.subr.mxu0 %v1022_v26 }
 0x12e   : > { %1482 = vmatprep.subr.mxu1 %v1022_v26  ;;  %1453 = vmatpush3.msra.mxu0 %v1022_v26 }
 0x12f   : > { %1498 = vmatpush3.msra.mxu1 %v1022_v26  ;;  %1454 = vmatprep.subr.mxu0 %v1021_v29  ;;  %v791_v53 = vpop.permute.xlu1 %790 }
 0x130   : > { %1483 = vmatprep.subr.mxu1 %v1021_v29  ;;  %1455 = vmatpush3.msra.mxu0 %v1021_v29 }
 0x131   : > { %1499 = vmatpush3.msra.mxu1 %v1021_v29  ;;  %1456 = vmatprep.subr.mxu0 %v1020_v37 }
 0x132   : > { %1484 = vmatprep.subr.mxu1 %v1020_v37  ;;  %1457 = vmatpush3.msra.mxu0 %v1020_v37 }
 0x133   : > { %1500 = vmatpush3.msra.mxu1 %v1020_v37  ;;  %1458 = vmatprep.subr.mxu0 %v1019_v24  ;;  %v795_v47 = vpop.permute.xlu1 %794 }
 0x134   : > { %1485 = vmatprep.subr.mxu1 %v1019_v24  ;;  %1459 = vmatpush3.msra.mxu0 %v1019_v24 }
 0x135   : > { %1501 = vmatpush3.msra.mxu1 %v1019_v24  ;;  %1460 = vmatprep.subr.mxu0 %v1018_v41 }
 0x136   : > { %1486 = vmatprep.subr.mxu1 %v1018_v41  ;;  %1461 = vmatpush3.msra.mxu0 %v1018_v41 }
 0x137   : > { %1502 = vmatpush3.msra.mxu1 %v1018_v41  ;;  %1462 = vmatprep.subr.mxu0 %v1017_v31  ;;  %v817_v21 = vpop.permute.xlu1 %816 }
 0x138   : > { %1487 = vmatprep.subr.mxu1 %v1017_v31  ;;  %1463 = vmatpush3.msra.mxu0 %v1017_v31 }
 0x139   : > { %1503 = vmatpush3.msra.mxu1 %v1017_v31  ;;  %1464 = vmatprep.subr.mxu0 %v1016_v33 }
 0x13a   : > { %1488 = vmatprep.subr.mxu1 %v1016_v33  ;;  %1465 = vmatpush3.msra.mxu0 %v1016_v33 }
 0x13b   : > { %1504 = vmatpush3.msra.mxu1 %v1016_v33  ;;  %1466 = vmatprep.subr.mxu0 %v1015_v2 }
 0x13c   : > { %1489 = vmatprep.subr.mxu1 %v1015_v2  ;;  %1467 = vmatpush3.msra.mxu0 %v1015_v2 }
 0x13d   : > { %1505 = vmatpush3.msra.mxu1 %v1015_v2  ;;  %1471 = vmatprep.mubr.f32.mxu1 %v2084_v45 }
 0x13e   : > { %1469 = vmatmul.mubr.f32.vlgmr.msra.gmra.mxu0 %v2074_v39  ;;  %1472 = vmatmul.mubr.f32.vlgmr.msra.gmra.mxu1 %v2092_v46 }
 0x1dc   : > { %v1406_v8 = vpop.f32.mrf.mxu1 }
 0x1dd   : > { %v768_v38 = vadd.f32 %v1406_v8, %v686_v32 }
 0x1de   : > { %v762_v58 = vpop.f32.mrf.mxu1 }
 0x1df   : > { %v763_v36 = vadd.f32 %v762_v58, %v682_v34  ;;  %v782_v42 = vmax.f32 %v768_v38, 0.0 }
 0x1e1   : > { %v781_v10 = vmax.f32 %v763_v36, 0.0  ;;  %v1409_v12 = vpop.f32.mrf.mxu1  ;;  %v802_v13 = vmul.f32 %v791_v53, %v782_v42 }
 0x1e2   : > { %v778_v43 = vadd.f32 %v1409_v12, %v694_v30 }
 0x1e3   : > { %v772_v45 = vpop.f32.mrf.mxu1  ;;  %v801_v39 = vmul.f32 %v787_v40, %v781_v10 }
 0x1e4   : > { %v784_v16 = vmax.f32 %v778_v43, 0.0  ;;  %v773_v46 = vadd.f32 %v772_v45, %v690_v6 }
 0x1e5   : > { %v805_v49 = vadd.f32 %v802_v13, %v801_v39 }
 0x1e6   : > { %v783_v55 = vmax.f32 %v773_v46, 0.0  ;;  %v804_v35 = vmul.f32 %v799_v56, %v784_v16 }
 0x1e8   : > { %v803_v48 = vmul.f32 %v795_v47, %v783_v55 }
 0x1ea   : > { %v806_v17 = vadd.f32 %v805_v49, %v803_v48 }
 0x1ec   : > { %v807_v18 = vadd.f32 %v806_v17, %v804_v35 }
 0x1ee   : > { %v808_v51 = vrot.slane %v807_v18, 4 }
 0x1f0   : > { %v809_v52 = vadd.f32 %v808_v51, %v807_v18 }
 0x1f2   : > { %v810_v15 = vrot.slane %v809_v52, 2 }
 0x1f4   : > { %v811_v61 = vadd.f32 %v810_v15, %v809_v52 }
 0x1f6   : > { %v812_v57 = vrot.slane %v811_v61, 1 }
 0x1f8   : > { %v813_v22 = vadd.f32 %v812_v57, %v811_v61 }
 0x1fa   : > { %v819_v62 = vadd.f32 %v817_v21, %v813_v22 }
 0x1fc   : > { %824 = vst.msk [vmem:[%s2146_s13] sm:$0x1] %vm2142_vm2, %v819_v62 }
 0x1fe   : > { %v1470_v63 = vpop.f32.mrf.mxu0  ;;  %v1473_v23 = vpop.f32.mrf.mxu1 }
 0x1ff   : > { %v1103_v0 = vadd.f32 %v1470_v63, %v686_v32  ;;  %v1113_v5 = vadd.f32 %v1473_v23, %v694_v30 }
 0x200   : > { %v1097_v3 = vpop.f32.mrf.mxu0  ;;  %v1107_v1 = vpop.f32.mrf.mxu1 }
 0x201   : > { %v1117_v4 = vmax.f32 %v1103_v0, 0.0  ;;  %v1098_v9 = vadd.f32 %v1097_v3, %v682_v34  ;;  %v1108_v19 = vadd.f32 %v1107_v1, %v690_v6  ;;  %v1119_v25 = vmax.f32 %v1113_v5, 0.0 }
 0x203   : > { %v1116_v26 = vmax.f32 %v1098_v9, 0.0  ;;  %v1118_v11 = vmax.f32 %v1108_v19, 0.0  ;;  %v1121_v20 = vmul.f32 %v1117_v4, %v791_v53  ;;  %v1123_v50 = vmul.f32 %v1119_v25, %v799_v56 }
 0x205   : > { %v1120_v29 = vmul.f32 %v1116_v26, %v787_v40  ;;  %v1122_v44 = vmul.f32 %v1118_v11, %v795_v47 }
 0x207   : > { %v1124_v27 = vadd.f32 %v1121_v20, %v1120_v29 }
 0x209   : > { %v1125_v37 = vadd.f32 %v1124_v27, %v1122_v44 }
 0x20b   : > { %v1126_v7 = vadd.f32 %v1125_v37, %v1123_v50 }
 0x20d   : > { %v1127_v14 = vrot.slane %v1126_v7, 4 }
 0x20f   : > { %v1128_v24 = vadd.f32 %v1127_v14, %v1126_v7 }
 0x211   : > { %v1129_v60 = vrot.slane %v1128_v24, 2 }
 0x213   : > { %v1130_v41 = vadd.f32 %v1129_v60, %v1128_v24 }
 0x215   : > { %v1131_v28 = vrot.slane %v1130_v41, 1 }
 0x217   : > { %v1132_v31 = vadd.f32 %v1131_v28, %v1130_v41 }
 0x219   : > { %v1133_v33 = vadd.f32 %v1132_v31, %v817_v21 }
 0x21b   : > { %1265 = vst.msk [vmem:[%s2146_s13 + $0x1] sm:$0x1] %vm2142_vm2, %v1133_v33 }
 0x21c   : > { %1572 = shalt.err (!%p1569_p3)
}
 0x21d   : > { %s1573_s7 = scalar_lea.hbm %s1149_s23, 32  ;;  %s1577_s10 = scalar_lea.hbm %s2195_s5, 128 }
 0x21e   : > { %p1574_p4 = scmp.ne.s32.totalorder %s1149_s23, %s1573_s7  ;;  %p1578_p9 = scmp.lt.s32.totalorder %s1149_s23, %s2195_s5 }
 0x21f   : > { %p1579_p10 = scmp.lt.s32.totalorder %s1577_s10, %s1573_s7 }
 0x220   : > { %p1575_p7 = pnand %p1574_p4, %p1694_p5 }
 0x221   : > { %p1580_p11 = por %p1579_p10, %p1578_p9 }
 0x222   : > { %p1576_p8 = pneg %p1575_p7 }
 0x224   : > { %p1581_p12 = pnand %p1580_p11, %p1576_p8 }
 0x226   : > { %1584 = shalt.err (!%p1581_p12)
}
 0x227   : > { %1506 = dma.vmem_to_hbm [thread:$0]  (%p1694_p5), %s1152_s15, 32, %s1149_s23, %s1137_s25  }
 0x228 PF: > { %p1512_p13 = scmp.ge.s32.totalorder %s1619_s21, 2  ;;  %s1163_s13 = sand.u32 1, %s1607_s18  }
 0x229   : > { %s1164_s14 = scalar_lea.sflag [#allocation3], %s1163_s13 }
 0x22a   : > { %p1509_p0 = pnand %p1512_p13, %p1698_p6 }
 0x22c   : > { %p1510_p1 = pneg %p1509_p0 }
 0x22e   : > { %1602 = dma.done.wait (%p1510_p1), %s1164_s14, 32  }
 0x22f   : > { %1604 = vsyncadd (%p1510_p1), %s1164_s14, 4294967264  ;;  %p15_p2 = scmp.ge.s32.totalorder %s1681_s24, 6   ;;  %s2200_s18 = smov %s1611_s19 }
 0x230   : > { %s2201_s19 = smov %s1615_s20  ;;  %s2202_s20 = smov %s1692_s27 }
 0x231   : > { %s2203_s21 = smov %s1681_s24  ;;  %17 = sbr.rel (!%p15_p2) target bundleno = 3 (0x3), region = 81 }
 0x236   :  { %1169 = vsyncpa [#allocation3], 1 }
 0x237   :  { %1171 = vsyncpa [#allocation3 + $0x1], 1 }

</bundles_post_ra>
